<compile_context>
chip_gen: v6e
topology: v6e:2x2x1
jax: 0.10.0
libtpu: 0.0.40
codegen_flags: <defaults>
</compile_context>

<pallas_src>
import functools

import jax
import jax.numpy as jnp
from jax.experimental import pallas as pl
from jax.experimental.pallas import tpu as pltpu


def _gelu_custom(x):
    # Exactly the PyTorch module's GELU (its bespoke coefficients, NOT the standard
    # 0.7978845608 / 0.044715 tanh-GELU):
    #   0.5 * x * (1 + tanh(x * (1.27323954 + 0.4054914823 * x * x)))
    return 0.5 * x * (1.0 + jnp.tanh(x * (1.27323954 + 0.4054914823 * x * x)))


# ----------------------------- kernels -----------------------------

def _ffn_kernel_full(x_ref, w1_ref, b1_ref, w2_ref, b2_ref, o_ref):
    # Full hidden dim resident: one shot, no accumulator.
    h = jnp.dot(x_ref[...], w1_ref[...], preferred_element_type=jnp.float32)
    h = h + b1_ref[...].astype(jnp.float32)
    g = _gelu_custom(h)
    y = jnp.dot(g.astype(w2_ref.dtype), w2_ref[...], preferred_element_type=jnp.float32)
    o_ref[...] = (y + b2_ref[...].astype(jnp.float32)).astype(o_ref.dtype)


def _ffn_kernel_stream_f32out(x_ref, w1_ref, b1_ref, w2_ref, b2_ref, o_ref):
    # H-streamed, f32 output: accumulate directly into the (resident) output block.
    j = pl.program_id(1)
    h = jnp.dot(x_ref[...], w1_ref[...], preferred_element_type=jnp.float32)
    h = h + b1_ref[...].astype(jnp.float32)
    g = _gelu_custom(h)
    contrib = jnp.dot(g.astype(w2_ref.dtype), w2_ref[...],
                      preferred_element_type=jnp.float32)

    @pl.when(j == 0)
    def _():
        o_ref[...] = contrib + b2_ref[...].astype(jnp.float32)

    @pl.when(j > 0)
    def _():
        o_ref[...] = o_ref[...] + contrib


def _ffn_kernel_stream_acc(x_ref, w1_ref, b1_ref, w2_ref, b2_ref, o_ref, acc_ref):
    # H-streamed, non-f32 output: f32 VMEM scratch accumulator.
    j = pl.program_id(1)

    @pl.when(j == 0)
    def _():
        acc_ref[...] = jnp.zeros_like(acc_ref)

    h = jnp.dot(x_ref[...], w1_ref[...], preferred_element_type=jnp.float32)
    h = h + b1_ref[...].astype(jnp.float32)
    g = _gelu_custom(h)
    acc_ref[...] += jnp.dot(g.astype(w2_ref.dtype), w2_ref[...],
                            preferred_element_type=jnp.float32)

    @pl.when(j == pl.num_programs(1) - 1)
    def _():
        o_ref[...] = (acc_ref[...] + b2_ref[...].astype(jnp.float32)).astype(o_ref.dtype)


# ----------------------------- tiling -----------------------------

def _round_up(x, m):
    return ((x + m - 1) // m) * m


def _vmem_budget_bytes():
    cap = 64 * 1024 * 1024  # conservative fallback: v7x per-TensorCore VMEM
    try:
        cap = int(pltpu.get_tpu_info().vmem_capacity_bytes)  # 128 MiB on v5e/v6e
    except Exception:
        pass
    return int(cap * 0.80)  # headroom for compiler-internal scratch


def _select_tiles(M, E, H, in_bytes, out_bytes, tile_m, tile_h, budget,
                  force_stream, f32_out):
    tm = min(tile_m, _round_up(M, 8))
    tm = max(8, (tm // 8) * 8)
    if pl.cdiv(M, tm) < 2 and M >= 16:
        # Prefer >= 2 row blocks so the "parallel" axis can shard across TensorCores.
        tm = max(8, ((M // 2) // 8) * 8)

    h128 = _round_up(H, 128)

    def full_bytes(tm_):
        w = (E * h128 + h128 * E + h128 + E) * in_bytes
        io = tm_ * E * (in_bytes + out_bytes)
        return 2 * (w + io)  # conservatively count double-buffering everywhere

    def stream_bytes(tm_, th_):
        w = (E * th_ + th_ * E + th_ + E) * in_bytes
        io = tm_ * E * (in_bytes + out_bytes)
        b = 2 * (w + io)
        if not f32_out:
            b += tm_ * E * 4  # f32 scratch accumulator
        return b

    if not force_stream and full_bytes(tm) <= budget:
        return tm, h128, True

    th = min(tile_h, h128)
    th = max(128, (th // 128) * 128)
    while th > 128 and stream_bytes(tm, th) > budget:
        th = max(128, ((th // 2) // 128) * 128)
    while tm > 8 and stream_bytes(tm, th) > budget:
        # Shrink tm only as a last resort -- tm sets arithmetic intensity.
        tm = max(8, ((tm // 2) // 8) * 8)
    return tm, th, False


# ----------------------------- wrapper -----------------------------

@functools.partial(jax.jit,
                   static_argnames=("tile_m", "tile_h", "compute_dtype", "force_stream"))
def feed_forward(x, w1, b1, w2, b2, *, tile_m=512, tile_h=1024,
                 compute_dtype=None, force_stream=False):
    """x: [B, T, E] -> [B, T, E].  w1: [E, H], b1: [H]/[1,H], w2: [H, E], b2: [E]/[1,E].

    compute_dtype: optionally cast operands (e.g. jnp.bfloat16) for native MXU throughput;
    accumulation stays f32 and the output keeps x's original dtype.
    """
    B, T, E = x.shape
    H = w1.shape[1]
    M = B * T
    out_dtype = x.dtype

    b1 = b1.reshape(1, -1)
    b2 = b2.reshape(1, -1)
    if compute_dtype is not None:
        cd = jnp.dtype(compute_dtype)
        x, w1, b1, w2, b2 = (a.astype(cd) for a in (x, w1, b1, w2, b2))

    x2d = x.reshape(M, E)
    in_bytes = x2d.dtype.itemsize
    out_bytes = jnp.dtype(out_dtype).itemsize
    f32_out = jnp.dtype(out_dtype) == jnp.float32

    budget = _vmem_budget_bytes()
    tm, th, full_resident = _select_tiles(M, E, H, in_bytes, out_bytes,
                                          tile_m, tile_h, budget,
                                          force_stream, f32_out)

    # Pad rows so the grid is exact; padded rows are sliced off afterwards.
    n_m = pl.cdiv(M, tm)
    m_pad = n_m * tm
    if m_pad != M:
        x2d = jnp.pad(x2d, ((0, m_pad - M), (0, 0)))

    # Zero-pad the hidden dim to a multiple of th (padded columns contribute 0).
    h_pad = _round_up(H, th)
    if h_pad != H:
        w1 = jnp.pad(w1, ((0, 0), (0, h_pad - H)))
        b1 = jnp.pad(b1, ((0, 0), (0, h_pad - H)))
        w2 = jnp.pad(w2, ((0, h_pad - H), (0, 0)))
    n_h = h_pad // th

    out_shape = jax.ShapeDtypeStruct((m_pad, E), out_dtype)

    if full_resident:
        out2d = pl.pallas_call(
            _ffn_kernel_full,
            out_shape=out_shape,
            grid=(n_m,),
            in_specs=[
                pl.BlockSpec((tm, E), lambda i: (i, 0)),        # x rows
                pl.BlockSpec((E, h_pad), lambda i: (0, 0)),     # full W1 (DMA'd once)
                pl.BlockSpec((1, h_pad), lambda i: (0, 0)),     # b1
                pl.BlockSpec((h_pad, E), lambda i: (0, 0)),     # full W2 (DMA'd once)
                pl.BlockSpec((1, E), lambda i: (0, 0)),         # b2
            ],
            out_specs=pl.BlockSpec((tm, E), lambda i: (i, 0)),
            compiler_params=pltpu.CompilerParams(
                dimension_semantics=("parallel",),
                vmem_limit_bytes=budget,
            ),
        )(x2d, w1, b1, w2, b2)
    else:
        kernel = _ffn_kernel_stream_f32out if f32_out else _ffn_kernel_stream_acc
        scratch = [] if f32_out else [pltpu.VMEM((tm, E), jnp.float32)]
        out2d = pl.pallas_call(
            kernel,
            out_shape=out_shape,
            grid=(n_m, n_h),
            in_specs=[
                pl.BlockSpec((tm, E), lambda i, j: (i, 0)),     # x rows (invariant over H)
                pl.BlockSpec((E, th), lambda i, j: (0, j)),     # W1 column block
                pl.BlockSpec((1, th), lambda i, j: (0, j)),     # b1 block
                pl.BlockSpec((th, E), lambda i, j: (j, 0)),     # W2 row block
                pl.BlockSpec((1, E), lambda i, j: (0, 0)),      # b2 (invariant)
            ],
            out_specs=pl.BlockSpec((tm, E), lambda i, j: (i, 0)),
            scratch_shapes=scratch,
            compiler_params=pltpu.CompilerParams(
                dimension_semantics=("parallel", "arbitrary"),
                vmem_limit_bytes=budget,
            ),
        )(x2d, w1, b1, w2, b2)

    if m_pad != M:
        out2d = out2d[:M]
    return out2d.reshape(B, T, E)


def feed_forward_ref(x, w1, b1, w2, b2):
    E = x.shape[-1]
    xf = x.reshape(-1, E).astype(jnp.float32)
    h = xf @ w1.astype(jnp.float32) + b1.reshape(1, -1).astype(jnp.float32)
    g = _gelu_custom(h)
    y = g @ w2.astype(jnp.float32) + b2.reshape(1, -1).astype(jnp.float32)
    return y.reshape(x.shape).astype(x.dtype)


if __name__ == "__main__":
    def make_inputs(seed, B, T, E, H, dtype):
        key = jax.random.PRNGKey(seed)
        kx, kw1, kb1, kw2, kb2 = jax.random.split(key, 5)
        x = jax.random.normal(kx, (B, T, E), dtype=jnp.float32)
        # nn.Linear-style ~1/sqrt(fan_in) synthetic params.
        w1 = jax.random.uniform(kw1, (E, H), minval=-1.0, maxval=1.0) / jnp.sqrt(E)
        b1 = jax.random.uniform(kb1, (1, H), minval=-1.0, maxval=1.0) / jnp.sqrt(E)
        w2 = jax.random.uniform(kw2, (H, E), minval=-1.0, maxval=1.0) / jnp.sqrt(H)
        b2 = jax.random.uniform(kb2, (1, E), minval=-1.0, maxval=1.0) / jnp.sqrt(H)
        return tuple(a.astype(dtype) for a in (x, w1, b1, w2, b2))

    # 1) Module-consistent small config (emb_dim=32, hidden=4*32): full-resident path.
    x, w1, b1, w2, b2 = make_inputs(0, 2, 8, 32, 128, jnp.float32)
    out = jax.block_until_ready(feed_forward(x, w1, b1, w2, b2))
    ref = feed_forward_ref(x, w1, b1, w2, b2)
    assert out.shape == x.shape
    assert jnp.allclose(out, ref, atol=1e-3, rtol=1e-3), "full-resident mismatch"

    # 2) Forced H-streaming path (f32 output -> in-place accumulation into o_ref).
    x, w1, b1, w2, b2 = make_inputs(1, 2, 16, 64, 256, jnp.float32)
    out = jax.block_until_ready(
        feed_forward(x, w1, b1, w2, b2, tile_h=128, force_stream=True))
    ref = feed_forward_ref(x, w1, b1, w2, b2)
    assert jnp.allclose(out, ref, atol=1e-3, rtol=1e-3), "streamed f32 mismatch"

    # 3) bf16 compute on f32 inputs (the "cast to bf16 in the wrapper" lever).
    out = jax.block_until_ready(
        feed_forward(x, w1, b1, w2, b2, tile_h=128, force_stream=True,
                     compute_dtype=jnp.bfloat16))
    assert jnp.allclose(out, ref, atol=5e-2, rtol=5e-2), "bf16-compute mismatch"

    # 4) bf16 end-to-end (bf16 output -> f32 scratch accumulator path).
    xb, w1b, b1b, w2b, b2b = (a.astype(jnp.bfloat16) for a in (x, w1, b1, w2, b2))
    outb = jax.block_until_ready(
        feed_forward(xb, w1b, b1b, w2b, b2b, tile_h=128, force_stream=True))
    refb = feed_forward_ref(xb, w1b, b1b, w2b, b2b)
    assert jnp.allclose(outb.astype(jnp.float32), refb.astype(jnp.float32),
                        atol=5e-2, rtol=5e-2), "bf16 end-to-end mismatch"

    print("KERNEL_OK")
</pallas_src>

<mosaic_0001>
module attributes {stable_mosaic.version = 11 : i64} {
  func.func @_ffn_kernel_full(%arg0: i32, %arg1: memref<8x32xf32, #tpu.memory_space<vmem>>, %arg2: memref<32x128xf32, #tpu.memory_space<vmem>>, %arg3: memref<1x128xf32, #tpu.memory_space<vmem>>, %arg4: memref<128x32xf32, #tpu.memory_space<vmem>>, %arg5: memref<1x32xf32, #tpu.memory_space<vmem>>, %arg6: memref<8x32xf32, #tpu.memory_space<vmem>>) attributes {dimension_semantics = [#tpu.dimension_semantics<parallel>], iteration_bounds = array<i64: 2>, scalar_prefetch = 0 : i64, scratch_operands = 0 : i64, tpu.core_type = #tpu.core_type<tc>, window_params = [{transform_indices = @transform_0, window_bounds = array<i64: 8, 32>}, {pipeline_mode = #tpu.pipeline_mode<synchronous>, transform_indices = @transform_1, window_bounds = array<i64: 32, 128>}, {pipeline_mode = #tpu.pipeline_mode<synchronous>, transform_indices = @transform_2, window_bounds = array<i64: 1, 128>}, {pipeline_mode = #tpu.pipeline_mode<synchronous>, transform_indices = @transform_3, window_bounds = array<i64: 128, 32>}, {pipeline_mode = #tpu.pipeline_mode<synchronous>, transform_indices = @transform_4, window_bounds = array<i64: 1, 32>}, {transform_indices = @transform_5, window_bounds = array<i64: 8, 32>}]} {
    %c0 = arith.constant 0 : index
    %c0_0 = arith.constant 0 : index
    %0 = vector.load %arg1[%c0, %c0_0] : memref<8x32xf32, #tpu.memory_space<vmem>>, vector<8x32xf32>
    %c0_1 = arith.constant 0 : index
    %c0_2 = arith.constant 0 : index
    %1 = vector.load %arg2[%c0_1, %c0_2] : memref<32x128xf32, #tpu.memory_space<vmem>>, vector<32x128xf32>
    %cst = arith.constant dense<0.000000e+00> : vector<8x128xf32>
    %2 = tpu.matmul %0, %1, %cst {dimension_numbers = #tpu.dot_dimension_numbers<[1], [0], [0], [1], [0, 0, 1, 1], [], []>} : vector<8x32xf32>, vector<32x128xf32>, vector<8x128xf32> -> vector<8x128xf32>
    %c0_3 = arith.constant 0 : index
    %c0_4 = arith.constant 0 : index
    %3 = vector.load %arg3[%c0_3, %c0_4] : memref<1x128xf32, #tpu.memory_space<vmem>>, vector<1x128xf32>
    %4 = vector.broadcast %3 : vector<1x128xf32> to vector<8x128xf32>
    %5 = arith.addf %2, %4 : vector<8x128xf32>
    %cst_5 = arith.constant 5.000000e-01 : f32
    %6 = vector.broadcast %cst_5 : f32 to vector<8x128xf32>
    %7 = arith.mulf %6, %5 : vector<8x128xf32>
    %cst_6 = arith.constant 0.405491471 : f32
    %8 = vector.broadcast %cst_6 : f32 to vector<8x128xf32>
    %9 = arith.mulf %8, %5 : vector<8x128xf32>
    %10 = arith.mulf %9, %5 : vector<8x128xf32>
    %cst_7 = arith.constant 1.27323949 : f32
    %11 = vector.broadcast %cst_7 : f32 to vector<8x128xf32>
    %12 = arith.addf %11, %10 : vector<8x128xf32>
    %13 = arith.mulf %5, %12 : vector<8x128xf32>
    %14 = math.tanh %13 : vector<8x128xf32>
    %cst_8 = arith.constant 1.000000e+00 : f32
    %15 = vector.broadcast %cst_8 : f32 to vector<8x128xf32>
    %16 = arith.addf %15, %14 : vector<8x128xf32>
    %17 = arith.mulf %7, %16 : vector<8x128xf32>
    %c0_9 = arith.constant 0 : index
    %c0_10 = arith.constant 0 : index
    %18 = vector.load %arg4[%c0_9, %c0_10] : memref<128x32xf32, #tpu.memory_space<vmem>>, vector<128x32xf32>
    %cst_11 = arith.constant dense<0.000000e+00> : vector<8x32xf32>
    %19 = tpu.matmul %17, %18, %cst_11 {dimension_numbers = #tpu.dot_dimension_numbers<[1], [0], [0], [1], [0, 0, 1, 1], [], []>} : vector<8x128xf32>, vector<128x32xf32>, vector<8x32xf32> -> vector<8x32xf32>
    %c0_12 = arith.constant 0 : index
    %c0_13 = arith.constant 0 : index
    %20 = vector.load %arg5[%c0_12, %c0_13] : memref<1x32xf32, #tpu.memory_space<vmem>>, vector<1x32xf32>
    %21 = vector.broadcast %20 : vector<1x32xf32> to vector<8x32xf32>
    %22 = arith.addf %19, %21 : vector<8x32xf32>
    %c0_14 = arith.constant 0 : index
    %c0_15 = arith.constant 0 : index
    %23 = vector.load %arg6[%c0_14, %c0_15] : memref<8x32xf32, #tpu.memory_space<vmem>>, vector<8x32xf32>
    tpu.vector_store %arg6[%c0_14, %c0_15], %22 {strides = array<i32>} : memref<8x32xf32, #tpu.memory_space<vmem>>, vector<8x32xf32>,
    return
  }
  func.func @transform_0(%arg0: i32) -> (i32, i32) {
    %c0_i32 = arith.constant 0 : i32
    %c0_i32_0 = arith.constant 0 : i32
    return %arg0, %c0_i32 : i32, i32
  }
  func.func @transform_1(%arg0: i32) -> (i32, i32) {
    %c0_i32 = arith.constant 0 : i32
    %c0_i32_0 = arith.constant 0 : i32
    %c0_i32_1 = arith.constant 0 : i32
    return %c0_i32, %c0_i32_0 : i32, i32
  }
  func.func @transform_2(%arg0: i32) -> (i32, i32) {
    %c0_i32 = arith.constant 0 : i32
    %c0_i32_0 = arith.constant 0 : i32
    %c0_i32_1 = arith.constant 0 : i32
    return %c0_i32, %c0_i32_0 : i32, i32
  }
  func.func @transform_3(%arg0: i32) -> (i32, i32) {
    %c0_i32 = arith.constant 0 : i32
    %c0_i32_0 = arith.constant 0 : i32
    %c0_i32_1 = arith.constant 0 : i32
    return %c0_i32, %c0_i32_0 : i32, i32
  }
  func.func @transform_4(%arg0: i32) -> (i32, i32) {
    %c0_i32 = arith.constant 0 : i32
    %c0_i32_0 = arith.constant 0 : i32
    %c0_i32_1 = arith.constant 0 : i32
    return %c0_i32, %c0_i32_0 : i32, i32
  }
  func.func @transform_5(%arg0: i32) -> (i32, i32) {
    %c0_i32 = arith.constant 0 : i32
    %c0_i32_0 = arith.constant 0 : i32
    return %arg0, %c0_i32 : i32, i32
  }
}

</mosaic_0001>

<bundles_post_ra>
// kernel: feed_forward.1
= control target key start
LH: loop header
LB: loop body
LE: loop exit
PB: predicated region body
PF: predicated region fallthrough
CT: control target
= control target key end

     0   :  { %10 = vsyncpa [#allocation3], 0  ;;  %s883_s0 = inlined_call_operand.vmem [shape: f32[16,32], index: 0, kind: input, shape index: {}]   ;;  %s884_s1 = inlined_call_operand.vmem [shape: f32[32,128], index: 1, kind: input, shape index: {}]   ;;  %s885_s2 = inlined_call_operand.vmem [shape: f32[1,128], index: 2, kind: input, shape index: {}]   ;;  %s886_s3 = inlined_call_operand.vmem [shape: f32[128,32], index: 3, kind: input, shape index: {}]   ;;  %s887_s4 = inlined_call_operand.vmem [shape: f32[1,32], index: 4, kind: input, shape index: {}]   ;;  %s888_s5 = inlined_call_operand.hbm [shape: f32[16,32], index: 5, kind: output, shape index: {}]  }
   0x1   :  { %12 = vsyncpa [#allocation3 + $0x1], 0  ;;  %s700_s18 = smov 0   ;;  %s702_s19 = smov 0  }
   0x2   :  { %s704_s20 = smov 0   ;;  %s706_s21 = smov 0  }
   0x3 LB: > { %s721_s22 = sadd.s32 4294967295, %s665_s21   ;;  %s481_s23 = sadd.s32 4294967294, %s665_s21   ;;  %s665_s21 = sphi %s706_s21, %s894_s21   ;;  %s661_s20 = sphi %s704_s20, %s893_s20   ;;  %s657_s19 = sphi %s702_s19, %s892_s19   ;;  %s653_s18 = sphi %s700_s18, %s891_s18  }
   0x4   : > { %s725_s24 = sadd.s32 1, %s665_s21   ;;  %s135_s25 = sadd.s32 1, %s661_s20 }
   0x5   : > { %s132_s26 = ssub.s32 %s665_s21, %s725_s24  ;;  %p145_p0 = scmp.ne.s32.totalorder %s661_s20, %s657_s19 }
   0x6   : > { %p133_p1 = scmp.eq.s32.totalorder %s132_s26, 0  ;;  %p146_p2 = scmp.eq.s32.totalorder %s721_s22, 1 }
   0x7   : > { %p151_p3 = scmp.ne.s32.totalorder %s657_s19, %s653_s18  ;;  %p152_p4 = scmp.eq.s32.totalorder %s481_s23, 1 }
   0x8   : > { %s736_s27 = scalar_select %p133_p1, %s661_s20, %s135_s25  }
   0x9   : > { %p738_p5 = por %p146_p2, %p145_p0  ;;  %p742_p6 = por %p152_p4, %p151_p3 }
   0xa   : > { %p484_p7 = scmp.ge.s32.totalorder %s665_s21, 1  ;;  %p189_p8 = scmp.lt.s32.totalorder %s665_s21, 3 }
   0xc   : > { %p190_p9 = pnand %p484_p7, %p189_p8 }
   0xd   : > { %p216_p10 = scmp.lt.s32.totalorder (!%p190_p9), %s721_s22, 1  ;;  %s213_s26 = sand.u32 (!%p190_p9), 1, %s657_s19  }
   0xe   : > { %193 = sbr.rel (%p190_p9) target bundleno = 457 (0x1c9), region = 40  ;;  %s485_s30 = sshll.u32 (!%p190_p9), %s213_s26, 3 }
   0xf   : > { %s491_s8 = sshll.u32 (!%p190_p9), %s721_s22, 7  ;;  %s215_s9 = scalar_lea.vmem (!%p190_p9), [#allocation2], %s485_s30 }
  0x10   : > { %s422_s10 = sshll.u32 (!%p190_p9), %s215_s9, 4  ;;  %s847_s13 = scalar_lea.hbm (!%p190_p9), %s888_s5, %s491_s8  ;;  %s423_s10 = int_to_ptr.vmem [resolvable:$true] %s422_s10 }
  0x11   : > { %s605_s15 = scalar_lea.vmem (!%p190_p9), %s423_s10, 128 }
  0x12   : > { %p606_p11 = scmp.ne.s32.totalorder (!%p190_p9), %s423_s10, %s605_s15 }
  0x13   : > { %v224_v0 = vld [vmem:[%s884_s1 + $0x18] sm:$0xff]  ;;  %v667_v1 = vmov 0.0   ;;  %v223_v2 = vld [vmem:[%s884_s1 + $0x10] sm:$0xff]  ;;  %vm668_vm0 = vmmov 0   ;;  %s217_s11 = scalar_select %p216_p10, %s721_s22, 1  ;;  %v222_v4 = vld [vmem:[%s884_s1 + $0x8] sm:$0xff] }
  0x14   : > { %516 = vmatprep.subr.mxu0 %v667_v1  ;;  %524 = vmatprep.mubr.msk.f32.mxu0 %vm668_vm0, %v667_v1  ;;  %v329_v3 = vld [vmem:[%s886_s3 + $0x78] sm:$0xff]  ;;  %v221_v5 = vld [vmem:[%s884_s1] sm:$0xff]  ;;  %vm232_vm1 = vcmask 261120   ;;  %v328_v7 = vld [vmem:[%s886_s3 + $0x70] sm:$0xff]  ;;  %p607_p12 = pnand %p606_p11, %p738_p5  ;;  %s669_s22 = smov [#allocation2]  }
  0x15   : > { %517 = vmatpush3.msra.mxu0 %v224_v0  ;;  %527 = vmatprep.subr.mxu1 %v667_v1  ;;  %s486_s14 = sshll.u32 %s217_s11, 3  ;;  %v327_v8 = vld [vmem:[%s886_s3 + $0x68] sm:$0xff]  ;;  %v326_v9 = vld [vmem:[%s886_s3 + $0x60] sm:$0xff]  ;;  %v325_v10 = vld [vmem:[%s886_s3 + $0x58] sm:$0xff]  ;;  %s609_s16 = sshll.u32 %s669_s22, 4  ;;  %s610_s16 = int_to_ptr.vmem [resolvable:$false] %s609_s16 }
  0x16   : > { %518 = vmatprep.subr.mxu0 %v667_v1  ;;  %528 = vmatpush3.msra.mxu1 %v329_v3  ;;  %s219_s25 = scalar_lea.vmem %s883_s0, %s486_s14  ;;  %v324_v11 = vld [vmem:[%s886_s3 + $0x50] sm:$0xff]  ;;  %v323_v12 = vld [vmem:[%s886_s3 + $0x48] sm:$0xff]  ;;  %v322_v13 = vld [vmem:[%s886_s3 + $0x40] sm:$0xff]  ;;  %s409_s14 = scalar_lea.sflag [#allocation3], %s213_s26 }
  0x17   : > { %519 = vmatpush3.msra.mxu0 %v223_v2  ;;  %529 = vmatprep.subr.mxu1 %v667_v1  ;;  %v220_v6 = vld [vmem:[%s219_s25] sm:$0xff]  ;;  %v321_v14 = vld [vmem:[%s886_s3 + $0x38] sm:$0xff]  ;;  %v320_v15 = vld [vmem:[%s886_s3 + $0x30] sm:$0xff]  ;;  %p608_p13 = pneg %p607_p12  ;;  %s611_s17 = scalar_lea.vmem %s610_s16, 256 }
  0x18   : > { %520 = vmatprep.subr.mxu0 %v667_v1  ;;  %559 = vmatprep.mubr.msk.f32.mxu1 %vm668_vm0, %v667_v1  ;;  %v319_v16 = vld [vmem:[%s886_s3 + $0x28] sm:$0xff]  ;;  %v318_v17 = vld [vmem:[%s886_s3 + $0x20] sm:$0xff]  ;;  %v317_v18 = vld [vmem:[%s886_s3 + $0x18] sm:$0xff]  ;;  %p612_p0 = scmp.lt.s32.totalorder %s423_s10, %s610_s16  ;;  %p613_p1 = scmp.lt.s32.totalorder %s611_s17, %s605_s15 }
  0x19   : > { %521 = vmatpush3.msra.mxu0 %v222_v4  ;;  %530 = vmatpush3.msra.mxu1 %v328_v7  ;;  %v316_v19 = vld [vmem:[%s886_s3 + $0x10] sm:$0xff]  ;;  %v315_v20 = vld [vmem:[%s886_s3 + $0x8] sm:$0xff]  ;;  %v314_v21 = vld [vmem:[%s886_s3] sm:$0xff] }
  0x1a   : > { %522 = vmatprep.subr.mxu0 %v667_v1  ;;  %531 = vmatprep.subr.mxu1 %v667_v1  ;;  %v487_v22 = vld [vmem:[%s885_s2] ss:$0 sm:$0xff]  ;;  %p614_p2 = por %p613_p1, %p612_p0 }
  0x1b   : > { %523 = vmatpush3.msra.mxu0 %v221_v5  ;;  %532 = vmatpush3.msra.mxu1 %v327_v8  ;;  %v489_v34 = vld [vmem:[%s887_s4] ss:$0 sm:$0xff] }
  0x1c   : > { %525 = vmatmul.mubr.msk.f32.vlgmr.msra.gmra.mxu0 %vm232_vm1, %v220_v6  ;;  %533 = vmatprep.subr.mxu1 %v667_v1  ;;  %p615_p3 = pnand %p614_p2, %p608_p13 }
  0x1d   : > { %534 = vmatpush3.msra.mxu1 %v326_v9 }
  0x1e   : > { %535 = vmatprep.subr.mxu1 %v667_v1 }
  0x1f   : > { %536 = vmatpush3.msra.mxu1 %v325_v10 }
  0x20   : > { %537 = vmatprep.subr.mxu1 %v667_v1 }
  0x21   : > { %538 = vmatpush3.msra.mxu1 %v324_v11 }
  0x22   : > { %539 = vmatprep.subr.mxu1 %v667_v1 }
  0x23   : > { %540 = vmatpush3.msra.mxu1 %v323_v12 }
  0x24   : > { %541 = vmatprep.subr.mxu1 %v667_v1 }
  0x25   : > { %542 = vmatpush3.msra.mxu1 %v322_v13 }
  0x26   : > { %543 = vmatprep.subr.mxu1 %v667_v1 }
  0x27   : > { %544 = vmatpush3.msra.mxu1 %v321_v14 }
  0x28   : > { %545 = vmatprep.subr.mxu1 %v667_v1 }
  0x29   : > { %546 = vmatpush3.msra.mxu1 %v320_v15 }
  0x2a   : > { %547 = vmatprep.subr.mxu1 %v667_v1 }
  0x2b   : > { %548 = vmatpush3.msra.mxu1 %v319_v16 }
  0x2c   : > { %549 = vmatprep.subr.mxu1 %v667_v1 }
  0x2d   : > { %550 = vmatpush3.msra.mxu1 %v318_v17 }
  0x2e   : > { %551 = vmatprep.subr.mxu1 %v667_v1 }
  0x2f   : > { %552 = vmatpush3.msra.mxu1 %v317_v18 }
  0x30   : > { %553 = vmatprep.subr.mxu1 %v667_v1 }
  0x31   : > { %554 = vmatpush3.msra.mxu1 %v316_v19 }
  0x32   : > { %555 = vmatprep.subr.mxu1 %v667_v1 }
  0x33   : > { %556 = vmatpush3.msra.mxu1 %v315_v20 }
  0x34   : > { %557 = vmatprep.subr.mxu1 %v667_v1 }
  0x35   : > { %558 = vmatpush3.msra.mxu1 %v314_v21 }
  0xdc   : > { %v302_v23 = vpop.f32.mrf.mxu0 }
  0xdd   : > { %v303_v24 = vadd.f32 %v487_v22, %v302_v23 }
  0xde   : > { %v526_v25 = vpop.f32.mrf.mxu0 }
  0xdf   : > { %v307_v26 = vmul.f32 0.40549147, %v303_v24  ;;  %v306_v31 = vmul.f32 0.5, %v303_v24 }
  0xe1   : > { %v308_v27 = vmul.f32 %v307_v26, %v303_v24 }
  0xe3   : > { %v309_v28 = vadd.f32 1.2732395, %v308_v27 }
  0xe5   : > { %v310_v29 = vmul.f32 %v309_v28, %v303_v24 }
  0xe7   : > { %603 = vtanh.f32 %v310_v29 }
  0xf4   : > { %v604_v30 = vpop.eup %603 }
  0xf5   : > { %v312_v32 = vadd.f32 1.0, %v604_v30 }
  0xf7   : > { %v313_v33 = vmul.f32 %v312_v32, %v306_v31 }
  0xf9   : > { %560 = vmatmul.mubr.f32.vlgmr.msra.gmra.mxu1 %v313_v33 }
 0x1b9   : > { %v403_v35 = vpop.f32.mrf.mxu1 }
 0x1ba   : > { %v404_v36 = vadd.f32 %v489_v34, %v403_v35 }
 0x1bb   : > { %v561_v37 = vpop.f32.mrf.mxu1 }
 0x1bc   : > { %407 = vst.msk [vmem:[%s215_s9] sm:$0xff] %vm232_vm1, %v404_v36 }
 0x1bd   : > { %618 = shalt.err (!%p615_p3)
}
 0x1be   : > { %s619_s23 = scalar_lea.hbm %s847_s13, 128  ;;  %s623_s30 = scalar_lea.hbm %s888_s5, 256 }
 0x1bf   : > { %p620_p4 = scmp.ne.s32.totalorder %s847_s13, %s619_s23  ;;  %p624_p9 = scmp.lt.s32.totalorder %s847_s13, %s888_s5 }
 0x1c0   : > { %p625_p10 = scmp.lt.s32.totalorder %s623_s30, %s619_s23 }
 0x1c1   : > { %p621_p7 = pnand %p620_p4, %p738_p5 }
 0x1c2   : > { %p626_p11 = por %p625_p10, %p624_p9 }
 0x1c3   : > { %p622_p8 = pneg %p621_p7 }
 0x1c5   : > { %p627_p12 = pnand %p626_p11, %p622_p8 }
 0x1c7   : > { %630 = shalt.err (!%p627_p12)
}
 0x1c8   : > { %562 = dma.vmem_to_hbm [thread:$0]  (%p738_p5), %s423_s10, 128, %s847_s13, %s409_s14  }
 0x1c9 PF: > { %p568_p13 = scmp.ge.s32.totalorder %s665_s21, 2  ;;  %s434_s8 = sand.u32 1, %s653_s18  }
 0x1ca   : > { %s435_s9 = scalar_lea.sflag [#allocation3], %s434_s8 }
 0x1cb   : > { %p565_p0 = pnand %p568_p13, %p742_p6 }
 0x1cd   : > { %p566_p1 = pneg %p565_p0 }
 0x1cf   : > { %648 = dma.done.wait (%p566_p1), %s435_s9, 128  }
 0x1d0   : > { %650 = vsyncadd (%p566_p1), %s435_s9, 4294967168  ;;  %p15_p2 = scmp.ge.s32.totalorder %s725_s24, 4   ;;  %s891_s18 = smov %s657_s19 }
 0x1d1   : > { %s892_s19 = smov %s661_s20  ;;  %s893_s20 = smov %s736_s27 }
 0x1d2   : > { %s894_s21 = smov %s725_s24  ;;  %17 = sbr.rel (!%p15_p2) target bundleno = 3 (0x3), region = 75 }
 0x1d7   :  { %440 = vsyncpa [#allocation3], 1 }
 0x1d8   :  { %442 = vsyncpa [#allocation3 + $0x1], 1 }

</bundles_post_ra>
